<compile_context>
chip_gen: v7x
topology: tpu7x:2x2x1
jax: 0.10.0
libtpu: 0.0.40
codegen_flags: <defaults>
</compile_context>

<pallas_src>
import functools

import jax
import jax.numpy as jnp
from jax import lax
from jax.experimental import pallas as pl
from jax.experimental.pallas import tpu as pltpu

IN_FEATURES = 8
OUT_FEATURES = 4
PACK = 32                        # samples packed per lane-row
XP_WIDTH = PACK * IN_FEATURES    # 256 input lanes per packed row
OP_WIDTH = PACK * OUT_FEATURES   # 128 output lanes per packed row

_NEG_LARGE = -1e30               # big-negative instead of -inf avoids inf-inf NaN risk
_DEFAULT_TILE_ROWS = 4096        # packed rows per tile  (= 131072 samples, ~4 MiB read)
_SINGLE_BLOCK_MAX_N = 131072     # samples; below this the whole problem is one block
_VMEM_LIMIT = 48 * 1024 * 1024   # raised scoped-VMEM limit (safe on v5e/v6e/v7x)


def _round_up(x, m):
    return (x + m - 1) // m * m


def _group_allreduce(v, op):
    """v: (1, 128).  Lane l holds a per-(sample-group, channel) partial.

    A 5-step roll butterfly (shifts 4,8,16,32,64) leaves EVERY lane with the
    reduction over all 32 lanes of the same output channel (l mod 4), i.e. the
    per-channel reduction already broadcast back to each lane group.  Pure XLU.
    """
    for s in (4, 8, 16, 32, 64):
        v = op(v, pltpu.roll(v, s, 1))
    return v


def _mask_invalid(logits, row_offset, n_valid):
    """Mask logits of samples with global index >= n_valid (pad / OOB rows)."""
    rows = lax.broadcasted_iota(jnp.int32, logits.shape, 0)
    lanes = lax.broadcasted_iota(jnp.int32, logits.shape, 1)
    sample = (row_offset + rows) * PACK + lanes // OUT_FEATURES
    return jnp.where(sample < n_valid, logits, _NEG_LARGE)


# ----------------------------------------------------------------------------
# Single-block fused kernel: whole (lane-packed) problem in VMEM.
# ----------------------------------------------------------------------------
def _fused_kernel(xp_ref, wbd_ref, o_ref, *, n_valid, mask_needed):
    # xp_ref: (Rp, 256), wbd_ref: (256, 128), o_ref: (Rp, 128)
    logits = jnp.dot(xp_ref[...], wbd_ref[...], preferred_element_type=jnp.float32)
    if mask_needed:                       # compiled in only when padding exists
        logits = _mask_invalid(logits, 0, n_valid)
    m = _group_allreduce(jnp.max(logits, axis=0, keepdims=True), jnp.maximum)
    e = jnp.exp(logits - m)
    denom = _group_allreduce(jnp.sum(e, axis=0, keepdims=True), jnp.add)
    # approx=True EUP reciprocal (~1e-4 rel err) would endanger the 1e-5 tolerance.
    o_ref[...] = (e * pl.reciprocal(denom, approx=False)).astype(o_ref.dtype)


# ----------------------------------------------------------------------------
# Tiled two-pass path for large N.
# Pass 1: online running max / sum-of-exp over all batch tiles (reduction axis).
# ----------------------------------------------------------------------------
def _stats_kernel(xp_ref, wbd_ref, m_ref, l_ref, *, n_valid, tile_rows, mask_needed):
    i = pl.program_id(0)

    @pl.when(i == 0)
    def _init():
        m_ref[...] = jnp.full_like(m_ref, _NEG_LARGE)
        l_ref[...] = jnp.zeros_like(l_ref)

    logits = jnp.dot(xp_ref[...], wbd_ref[...], preferred_element_type=jnp.float32)
    if mask_needed:                       # compiled in only when ragged/padded
        logits = _mask_invalid(logits, i * tile_rows, n_valid)

    local_max = _group_allreduce(jnp.max(logits, axis=0, keepdims=True), jnp.maximum)
    m_prev = m_ref[...]
    m_new = jnp.maximum(m_prev, local_max)
    local_sum = _group_allreduce(
        jnp.sum(jnp.exp(logits - m_new), axis=0, keepdims=True), jnp.add)
    l_ref[...] = l_ref[...] * jnp.exp(m_prev - m_new) + local_sum
    m_ref[...] = m_new

    @pl.when(i == pl.num_programs(0) - 1)
    def _finalize():
        # Fold the divide into pass 1: pass 2 only does a broadcast multiply.
        l_ref[...] = pl.reciprocal(l_ref[...], approx=False)


# Pass 2: recompute logits per tile (memory-bound) and normalize with resident stats.
def _normalize_kernel(xp_ref, wbd_ref, m_ref, linv_ref, o_ref):
    logits = jnp.dot(xp_ref[...], wbd_ref[...], preferred_element_type=jnp.float32)
    o_ref[...] = (jnp.exp(logits - m_ref[...]) * linv_ref[...]).astype(o_ref.dtype)


# ----------------------------------------------------------------------------
# Wrapper
# ----------------------------------------------------------------------------
@functools.partial(jax.jit, static_argnames=("tile_rows", "single_block_max_n"))
def survivor_forward(x, w, *, tile_rows=_DEFAULT_TILE_ROWS,
                     single_block_max_n=_SINGLE_BLOCK_MAX_N):
    """x: (N, 8) float32, w: (4, 8) float32 (PyTorch Linear layout). Returns (N, 4)."""
    n = x.shape[0]
    assert x.shape[1] == IN_FEATURES
    assert w.shape == (OUT_FEATURES, IN_FEATURES)
    x = x.astype(jnp.float32)
    w = w.astype(jnp.float32)

    # Pack 32 samples per lane-row: (N, 8) -> (N/32, 256).  Row-major contiguous,
    # so the reshape is free; a copy (pad) only happens when N % 32 != 0.
    n32 = _round_up(n, PACK)
    if n32 != n:
        x = jnp.pad(x, ((0, n32 - n), (0, 0)))
    rp = n32 // PACK
    xp = x.reshape(rp, XP_WIDTH)

    # Block-diagonal weights: Wbd[8g + f, 4g + c] = W[c, f]  -> one MXU dot per tile
    # performs all 32 packed 8->4 contractions with both operands lane-dense.
    wbd = jnp.kron(jnp.eye(PACK, dtype=jnp.float32), w.T)          # (256, 128)

    if n <= single_block_max_n:
        out_p = pl.pallas_call(
            functools.partial(_fused_kernel, n_valid=n, mask_needed=(n32 != n)),
            out_shape=jax.ShapeDtypeStruct((rp, OP_WIDTH), jnp.float32),
            in_specs=[
                pl.BlockSpec((rp, XP_WIDTH), lambda: (0, 0)),
                pl.BlockSpec((XP_WIDTH, OP_WIDTH), lambda: (0, 0)),
            ],
            out_specs=pl.BlockSpec((rp, OP_WIDTH), lambda: (0, 0)),
            compiler_params=pltpu.CompilerParams(vmem_limit_bytes=_VMEM_LIMIT),
        )(xp, wbd)
    else:
        tr = max(8, min(int(tile_rows), _round_up(rp, 8)))
        tr = _round_up(tr, 8)
        num_tiles = pl.cdiv(rp, tr)
        # Masking is only compiled in when padded samples or ragged trailing
        # blocks can actually occur -> aligned shapes pay zero VALU mask cost.
        mask_needed = (n32 != n) or (rp % tr != 0)

        # Pass 1: softmax statistics over the whole batch (stats blocks keep a
        # constant index -> resident in VMEM across the "arbitrary" reduction axis).
        m_stat, linv_stat = pl.pallas_call(
            functools.partial(_stats_kernel, n_valid=n, tile_rows=tr,
                              mask_needed=mask_needed),
            out_shape=(
                jax.ShapeDtypeStruct((1, OP_WIDTH), jnp.float32),
                jax.ShapeDtypeStruct((1, OP_WIDTH), jnp.float32),
            ),
            grid=(num_tiles,),
            in_specs=[
                pl.BlockSpec((tr, XP_WIDTH), lambda i: (i, 0)),
                pl.BlockSpec((XP_WIDTH, OP_WIDTH), lambda i: (0, 0)),  # Wbd resident
            ],
            out_specs=(
                pl.BlockSpec((1, OP_WIDTH), lambda i: (0, 0)),
                pl.BlockSpec((1, OP_WIDTH), lambda i: (0, 0)),
            ),
            compiler_params=pltpu.CompilerParams(
                dimension_semantics=("arbitrary",),
                vmem_limit_bytes=_VMEM_LIMIT),
        )(xp, wbd)

        # Pass 2: independent tiles; lane-dense (tr, 128) output blocks.
        # TODO(synk): on v7x try pltpu.CORE_PARALLEL to shard tiles over both TCs.
        out_p = pl.pallas_call(
            _normalize_kernel,
            out_shape=jax.ShapeDtypeStruct((rp, OP_WIDTH), jnp.float32),
            grid=(num_tiles,),
            in_specs=[
                pl.BlockSpec((tr, XP_WIDTH), lambda i: (i, 0)),
                pl.BlockSpec((XP_WIDTH, OP_WIDTH), lambda i: (0, 0)),
                pl.BlockSpec((1, OP_WIDTH), lambda i: (0, 0)),
                pl.BlockSpec((1, OP_WIDTH), lambda i: (0, 0)),
            ],
            out_specs=pl.BlockSpec((tr, OP_WIDTH), lambda i: (i, 0)),
            compiler_params=pltpu.CompilerParams(
                dimension_semantics=("parallel",),
                vmem_limit_bytes=_VMEM_LIMIT),
        )(xp, wbd, m_stat, linv_stat)

    # Back to PyTorch layout (N, 4): free reshape; slice only when we padded.
    out = out_p.reshape(n32, OUT_FEATURES)
    if n32 != n:
        out = out[:n]
    return out


def _reference(x, w):
    logits = x.astype(jnp.float32) @ w.astype(jnp.float32).T
    return jax.nn.softmax(logits, axis=0)


if __name__ == "__main__":
    key = jax.random.PRNGKey(0)
    kx, kx2, kx3, kw = jax.random.split(key, 4)

    # Deterministic init matching nn.Linear default: U(-1/sqrt(in), 1/sqrt(in)).
    bound = 1.0 / (IN_FEATURES ** 0.5)
    w = jax.random.uniform(kw, (OUT_FEATURES, IN_FEATURES),
                           minval=-bound, maxval=bound, dtype=jnp.float32)

    # 1) Small aligned batch: zero-copy packing, single fused block, no masking.
    batch = 128
    x = jax.random.normal(kx, (batch, IN_FEATURES), dtype=jnp.float32)
    out = survivor_forward(x, w)
    jax.block_until_ready(out)
    assert out.shape == (batch, OUT_FEATURES)
    assert jnp.allclose(out, _reference(x, w), atol=1e-5, rtol=1e-5)

    # 2) Unaligned batch: exercises the pad + in-kernel sample masking.
    batch2 = 50
    x2 = jax.random.normal(kx2, (batch2, IN_FEATURES), dtype=jnp.float32)
    out2 = survivor_forward(x2, w)
    jax.block_until_ready(out2)
    assert out2.shape == (batch2, OUT_FEATURES)
    assert jnp.allclose(out2, _reference(x2, w), atol=1e-5, rtol=1e-5)

    # 3) Forced two-pass tiled path with tiny tiles + ragged trailing block.
    batch3 = 600
    x3 = jax.random.normal(kx3, (batch3, IN_FEATURES), dtype=jnp.float32)
    out3 = survivor_forward(x3, w, tile_rows=8, single_block_max_n=0)
    jax.block_until_ready(out3)
    assert out3.shape == (batch3, OUT_FEATURES)
    assert jnp.allclose(out3, _reference(x3, w), atol=1e-5, rtol=1e-5)

    print("KERNEL_OK")
</pallas_src>

<mosaic_0001>
module attributes {stable_mosaic.version = 11 : i64} {
  func.func @_fused_kernel(%arg0: memref<4x256xf32, #tpu.memory_space<vmem>>, %arg1: memref<256x128xf32, #tpu.memory_space<vmem>>, %arg2: memref<4x128xf32, #tpu.memory_space<vmem>>) attributes {dimension_semantics = [], scalar_prefetch = 0 : i64, scratch_operands = 0 : i64, tpu.core_type = #tpu.core_type<tc>} {
    %c0 = arith.constant 0 : index
    %c0_0 = arith.constant 0 : index
    %0 = vector.load %arg0[%c0, %c0_0] : memref<4x256xf32, #tpu.memory_space<vmem>>, vector<4x256xf32>
    %c0_1 = arith.constant 0 : index
    %c0_2 = arith.constant 0 : index
    %1 = vector.load %arg1[%c0_1, %c0_2] : memref<256x128xf32, #tpu.memory_space<vmem>>, vector<256x128xf32>
    %cst = arith.constant dense<0.000000e+00> : vector<4x128xf32>
    %2 = tpu.matmul %0, %1, %cst {dimension_numbers = #tpu.dot_dimension_numbers<[1], [0], [0], [1], [0, 0, 1, 1], [], []>} : vector<4x256xf32>, vector<256x128xf32>, vector<4x128xf32> -> vector<4x128xf32>
    %cst_3 = arith.constant dense<0xFF800000> : vector<128xf32>
    %3 = vector.multi_reduction <maximumf>, %2, %cst_3 [0] : vector<4x128xf32> to vector<128xf32>
    %4 = vector.shape_cast %3 : vector<128xf32> to vector<1x128xf32>
    %c4_i32 = arith.constant 4 : i32
    %5 = tpu.dynamic_rotate %4 by %c4_i32 dim 1 : vector<1x128xf32>, i32 -> vector<1x128xf32>
    %6 = arith.maximumf %4, %5 : vector<1x128xf32>
    %c8_i32 = arith.constant 8 : i32
    %7 = tpu.dynamic_rotate %6 by %c8_i32 dim 1 : vector<1x128xf32>, i32 -> vector<1x128xf32>
    %8 = arith.maximumf %6, %7 : vector<1x128xf32>
    %c16_i32 = arith.constant 16 : i32
    %9 = tpu.dynamic_rotate %8 by %c16_i32 dim 1 : vector<1x128xf32>, i32 -> vector<1x128xf32>
    %10 = arith.maximumf %8, %9 : vector<1x128xf32>
    %c32_i32 = arith.constant 32 : i32
    %11 = tpu.dynamic_rotate %10 by %c32_i32 dim 1 : vector<1x128xf32>, i32 -> vector<1x128xf32>
    %12 = arith.maximumf %10, %11 : vector<1x128xf32>
    %c64_i32 = arith.constant 64 : i32
    %13 = tpu.dynamic_rotate %12 by %c64_i32 dim 1 : vector<1x128xf32>, i32 -> vector<1x128xf32>
    %14 = arith.maximumf %12, %13 : vector<1x128xf32>
    %15 = vector.broadcast %14 : vector<1x128xf32> to vector<4x128xf32>
    %16 = arith.subf %2, %15 : vector<4x128xf32>
    %17 = math.exp %16 : vector<4x128xf32>
    %cst_4 = arith.constant dense<0.000000e+00> : vector<128xf32>
    %18 = vector.multi_reduction <add>, %17, %cst_4 [0] : vector<4x128xf32> to vector<128xf32>
    %19 = vector.shape_cast %18 : vector<128xf32> to vector<1x128xf32>
    %c4_i32_5 = arith.constant 4 : i32
    %20 = tpu.dynamic_rotate %19 by %c4_i32_5 dim 1 : vector<1x128xf32>, i32 -> vector<1x128xf32>
    %21 = arith.addf %19, %20 : vector<1x128xf32>
    %c8_i32_6 = arith.constant 8 : i32
    %22 = tpu.dynamic_rotate %21 by %c8_i32_6 dim 1 : vector<1x128xf32>, i32 -> vector<1x128xf32>
    %23 = arith.addf %21, %22 : vector<1x128xf32>
    %c16_i32_7 = arith.constant 16 : i32
    %24 = tpu.dynamic_rotate %23 by %c16_i32_7 dim 1 : vector<1x128xf32>, i32 -> vector<1x128xf32>
    %25 = arith.addf %23, %24 : vector<1x128xf32>
    %c32_i32_8 = arith.constant 32 : i32
    %26 = tpu.dynamic_rotate %25 by %c32_i32_8 dim 1 : vector<1x128xf32>, i32 -> vector<1x128xf32>
    %27 = arith.addf %25, %26 : vector<1x128xf32>
    %c64_i32_9 = arith.constant 64 : i32
    %28 = tpu.dynamic_rotate %27 by %c64_i32_9 dim 1 : vector<1x128xf32>, i32 -> vector<1x128xf32>
    %29 = arith.addf %27, %28 : vector<1x128xf32>
    %30 = tpu.reciprocal %29 : vector<1x128xf32> -> vector<1x128xf32>
    %31 = vector.broadcast %30 : vector<1x128xf32> to vector<4x128xf32>
    %32 = arith.mulf %17, %31 : vector<4x128xf32>
    %c0_10 = arith.constant 0 : index
    %c0_11 = arith.constant 0 : index
    %33 = vector.load %arg2[%c0_10, %c0_11] : memref<4x128xf32, #tpu.memory_space<vmem>>, vector<4x128xf32>
    tpu.vector_store %arg2[%c0_10, %c0_11], %32 {strides = array<i32>} : memref<4x128xf32, #tpu.memory_space<vmem>>, vector<4x128xf32>,
    return
  }
}

</mosaic_0001>

<bundles_post_ra>
// kernel: survivor_forward.1
= control target key start
LH: loop header
LB: loop body
LE: loop exit
PB: predicated region body
PF: predicated region fallthrough
CT: control target
= control target key end

     0   :  { %vm117_vm0 = vcmask 1043456   ;;  %s257_s18 = smov 4   ;;  %s259_s19 = smov 16   ;;  %s391_s1 = inlined_call_operand.vmem [shape: f32[256,128], index: 1, kind: input, shape index: {}]   ;;  %s392_s0 = inlined_call_operand.vmem [shape: f32[4,256], index: 0, kind: input, shape index: {}]   ;;  %s393_s2 = inlined_call_operand.vmem [shape: f32[4,128], index: 2, kind: output, shape index: {}]  }
   0x1   :  { %v28_v0 = vld [vmem:[%s391_s1 + $0x80] sm:$0xff]  ;;  %v29_v1 = vld [vmem:[%s391_s1 + $0x88] sm:$0xff]  ;;  %v30_v5 = vld [vmem:[%s391_s1 + $0x90] sm:$0xff]  ;;  %s260_s20 = smov 32   ;;  %s261_s21 = smov 64  }
   0x2   :  { %v12_v2 = vld [vmem:[%s391_s1] sm:$0xff]  ;;  %v215_v3 = vpack.c.bf16 %v29_v1, %v28_v0  ;;  %v13_v4 = vld [vmem:[%s391_s1 + $0x8] sm:$0xff]  ;;  %v31_v6 = vld [vmem:[%s391_s1 + $0x98] sm:$0xff] }
   0x3   :  { %v217_v7 = vpack.c.bf16 %v13_v4, %v12_v2  ;;  %v219_v8 = vpack.c.bf16 %v31_v6, %v30_v5  ;;  %v14_v9 = vld [vmem:[%s391_s1 + $0x10] sm:$0xff]  ;;  %v15_v10 = vld [vmem:[%s391_s1 + $0x18] sm:$0xff]  ;;  %v32_v11 = vld [vmem:[%s391_s1 + $0xa0] sm:$0xff]  ;;  %v140_v4 = vlaneseq }
   0x4   :  { %216 = vmatprep.subr.bf16.mxu0 %v215_v3  ;;  %v33_v12 = vld [vmem:[%s391_s1 + $0xa8] sm:$0xff]  ;;  %v221_v13 = vpack.c.bf16 %v15_v10, %v14_v9  ;;  %v16_v15 = vld [vmem:[%s391_s1 + $0x20] sm:$0xff]  ;;  %v34_v17 = vld [vmem:[%s391_s1 + $0xb0] sm:$0xff] }
   0x5   :  { %218 = vmatpush3.bf16.msra.mxu0 %v217_v7  ;;  %v223_v14 = vpack.c.bf16 %v33_v12, %v32_v11  ;;  %v17_v16 = vld [vmem:[%s391_s1 + $0x28] sm:$0xff]  ;;  %v35_v18 = vld [vmem:[%s391_s1 + $0xb8] sm:$0xff]  ;;  %v18_v21 = vld [vmem:[%s391_s1 + $0x30] sm:$0xff]  ;;  %v141_v5 = vshrl.u32 %v140_v4, 7 }
   0x6   :  { %220 = vmatprep.subr.bf16.mxu0 %v219_v8  ;;  %v225_v19 = vpack.c.bf16 %v17_v16, %v16_v15  ;;  %v227_v20 = vpack.c.bf16 %v35_v18, %v34_v17  ;;  %v19_v22 = vld [vmem:[%s391_s1 + $0x38] sm:$0xff]  ;;  %v36_v23 = vld [vmem:[%s391_s1 + $0xc0] sm:$0xff]  ;;  %v37_v24 = vld [vmem:[%s391_s1 + $0xc8] sm:$0xff] }
   0x7   :  { %v11_v25 = vld [vmem:[%s392_s0] sm:$0xff]  ;;  %v229_v27 = vpack.c.bf16 %v19_v22, %v18_v21  ;;  %v231_v28 = vpack.c.bf16 %v37_v24, %v36_v23  ;;  %v21_v30 = vld [vmem:[%s391_s1 + $0x48] sm:$0xff]  ;;  %v38_v31 = vld [vmem:[%s391_s1 + $0xd0] sm:$0xff]  ;;  %v142_v6 = vsub.s32 0, %v141_v5 }
   0x8   :  { %v45_v26 = vcombine.high %v11_v25, %v11_v25  ;;  %v20_v29 = vld [vmem:[%s391_s1 + $0x40] sm:$0xff]  ;;  %v39_v32 = vld [vmem:[%s391_s1 + $0xd8] sm:$0xff]  ;;  %v22_v35 = vld [vmem:[%s391_s1 + $0x50] sm:$0xff] }
   0x9   :  { %222 = vmatpush3.bf16.msra.mxu0 %v221_v13  ;;  %v233_v33 = vpack.c.bf16 %v21_v30, %v20_v29  ;;  %v235_v34 = vpack.c.bf16 %v39_v32, %v38_v31  ;;  %v23_v36 = vld [vmem:[%s391_s1 + $0x58] sm:$0xff]  ;;  %v40_v37 = vld [vmem:[%s391_s1 + $0xe0] sm:$0xff]  ;;  %v41_v38 = vld [vmem:[%s391_s1 + $0xe8] sm:$0xff] }
   0xa   :  { %224 = vmatprep.subr.bf16.mxu0 %v223_v14  ;;  %111 = vmatprep.mubr.f32.mxu0 %v45_v26  ;;  %v237_v39 = vpack.c.bf16 %v23_v36, %v22_v35  ;;  %v239_v40 = vpack.c.bf16 %v41_v38, %v40_v37  ;;  %v24_v41 = vld [vmem:[%s391_s1 + $0x60] sm:$0xff]  ;;  %v25_v42 = vld [vmem:[%s391_s1 + $0x68] sm:$0xff]  ;;  %v42_v43 = vld [vmem:[%s391_s1 + $0xf0] sm:$0xff] }
   0xb   :  { %v43_v44 = vld [vmem:[%s391_s1 + $0xf8] sm:$0xff]  ;;  %v241_v45 = vpack.c.bf16 %v25_v42, %v24_v41  ;;  %v26_v47 = vld [vmem:[%s391_s1 + $0x70] sm:$0xff] }
   0xc   :  { %v243_v46 = vpack.c.bf16 %v43_v44, %v42_v43  ;;  %v27_v48 = vld [vmem:[%s391_s1 + $0x78] sm:$0xff]  ;;  %s258_s1 = smov 8  }
   0xd   :  { %226 = vmatpush3.bf16.msra.mxu0 %v225_v19  ;;  %v245_v49 = vpack.c.bf16 %v27_v48, %v26_v47 }
   0xe   :  { %228 = vmatprep.subr.bf16.mxu0 %v227_v20 }
  0x11   :  { %230 = vmatpush3.bf16.msra.mxu0 %v229_v27 }
  0x12   :  { %232 = vmatprep.subr.bf16.mxu0 %v231_v28 }
  0x15   :  { %234 = vmatpush3.bf16.msra.mxu0 %v233_v33 }
  0x16   :  { %236 = vmatprep.subr.bf16.mxu0 %v235_v34 }
  0x19   :  { %238 = vmatpush3.bf16.msra.mxu0 %v237_v39 }
  0x1a   :  { %240 = vmatprep.subr.bf16.mxu0 %v239_v40 }
  0x1d   :  { %242 = vmatpush3.bf16.msra.mxu0 %v241_v45 }
  0x1e   :  { %244 = vmatprep.subr.bf16.mxu0 %v243_v46 }
  0x21   :  { %246 = vmatpush3.bf16.msra.mxu0 %v245_v49 }
  0x24   :  { %112 = vmatmul.mubr.f32.vlgmr.msra.gmra.mrb[0].mxu0 %v11_v25 }
  0xf7   :  { %v212_v50 = vpop.f32.mrb[0].mxu0 }
  0xf8   :  { %v213_v51 = vpop.f32.mrb[1].mxu0 }
  0xf9   :  { %v214_v52 = vadd.f32 %v213_v51, %v212_v50 }
  0xfb   :  { %v118_v53 = vsel %vm117_vm0, %v214_v52, -inf }
  0xfc   :  { %v119_v54 = vrot.slane %v118_v53, 4 }
  0xfe   :  { %v120_v55 = vmax.f32 %v118_v53, %v119_v54 }
 0x100   :  { %v121_v56 = vrot.slane %v120_v55, 2 }
 0x102   :  { %v122_v57 = vmax.f32 %v120_v55, %v121_v56 }
 0x104   :  { %v123_v58 = vrot.slane %v122_v57, 1 }
 0x106   :  { %v124_v59 = vmax.f32 %v122_v57, %v123_v58 }
 0x108   :  { %125 = vrot.lane.b32.xlu0 %v124_v59, %s257_s18 }
 0x17a   :  { %v126_v60 = vpop.permute.xlu0 %125 }
 0x17b   :  { %v127_v61 = vmax.f32 %v124_v59, %v126_v60 }
 0x17d   :  { %128 = vrot.lane.b32.xlu0 %v127_v61, %s258_s1 }
 0x1ef   :  { %v129_v62 = vpop.permute.xlu0 %128 }
 0x1f0   :  { %v130_v63 = vmax.f32 %v127_v61, %v129_v62 }
 0x1f2   :  { %131 = vrot.lane.b32.xlu1 %v130_v63, %s259_s19 }
 0x264   :  { %v132_v0 = vpop.permute.xlu1 %131 }
 0x265   :  { %v133_v1 = vmax.f32 %v130_v63, %v132_v0 }
 0x267   :  { %134 = vrot.lane.b32.xlu1 %v133_v1, %s260_s20 }
 0x2d9   :  { %v135_v2 = vpop.permute.xlu1 %134 }
 0x2da   :  { %v136_v3 = vmax.f32 %v133_v1, %v135_v2 }
 0x2dc   :  { %137 = vrot.lane.b32.xlu0 %v136_v3, %s261_s21 }
 0x34e   :  { %v138_v7 = vpop.permute.xlu0 %137 }
 0x34f   :  { %v139_v8 = vmax.f32 %v136_v3, %v138_v7 }
 0x351   :  { %v143_v9 = vrot.slane %v139_v8, %v142_v6 }
 0x353   :  { %v144_v10 = vsub.f32 %v214_v52, %v143_v9 }
 0x355   :  { %v145_v11 = vmul.f32 1.442695, %v144_v10 }
 0x357   :  { %253 = vpow2.f32 %v145_v11 }
 0x361   :  { %v254_v12 = vpop.eup %253 }
 0x362   :  { %v147_v13 = vsel %vm117_vm0, %v254_v12, 0.0 }
 0x363   :  { %v148_v14 = vrot.slane %v147_v13, 4 }
 0x365   :  { %v149_v15 = vadd.f32 %v148_v14, %v147_v13 }
 0x367   :  { %v150_v16 = vrot.slane %v149_v15, 2 }
 0x369   :  { %v151_v17 = vadd.f32 %v150_v16, %v149_v15 }
 0x36b   :  { %v152_v18 = vrot.slane %v151_v17, 1 }
 0x36d   :  { %v153_v19 = vadd.f32 %v152_v18, %v151_v17 }
 0x36f   :  { %154 = vrot.lane.b32.xlu1 %v153_v19, %s257_s18 }
 0x3e1   :  { %v155_v20 = vpop.permute.xlu1 %154 }
 0x3e2   :  { %v156_v21 = vadd.f32 %v155_v20, %v153_v19 }
 0x3e4   :  { %157 = vrot.lane.b32.xlu0 %v156_v21, %s258_s1 }
 0x456   :  { %v158_v22 = vpop.permute.xlu0 %157 }
 0x457   :  { %v159_v23 = vadd.f32 %v158_v22, %v156_v21 }
 0x459   :  { %160 = vrot.lane.b32.xlu1 %v159_v23, %s259_s19 }
 0x4cb   :  { %v161_v24 = vpop.permute.xlu1 %160 }
 0x4cc   :  { %v162_v25 = vadd.f32 %v161_v24, %v159_v23 }
 0x4ce   :  { %163 = vrot.lane.b32.xlu0 %v162_v25, %s260_s20 }
 0x540   :  { %v164_v26 = vpop.permute.xlu0 %163 }
 0x541   :  { %v165_v27 = vadd.f32 %v164_v26, %v162_v25 }
 0x543   :  { %166 = vrot.lane.b32.xlu1 %v165_v27, %s261_s21 }
 0x5b5   :  { %v167_v28 = vpop.permute.xlu1 %166 }
 0x5b6   :  { %v168_v29 = vadd.f32 %v167_v28, %v165_v27 }
 0x5b8   :  { %255 = vrcp.f32 %v168_v29 }
 0x5c2   :  { %v256_v30 = vpop.eup %255 }
 0x5c3   :  { %v173_v31 = vrot.slane %v256_v30, %v142_v6 }
 0x5c5   :  { %v174_v32 = vmul.f32 %v254_v12, %v173_v31 }
 0x5c7   :  { %175 = vst [vmem:[%s393_s2] sm:$0xf] %v174_v32 }

</bundles_post_ra>
